<compile_context>
chip_gen: v5e
topology: v5e:2x2
jax: 0.10.0
libtpu: 0.0.40
codegen_flags: <defaults>
</compile_context>

<pallas_src>
import functools

import jax
import jax.numpy as jnp
from jax.experimental import pallas as pl
from jax.experimental.pallas import tpu as pltpu

LANE = 128     # vreg lane width (last dim)
SUBLANE = 8    # vreg sublane width (second-to-last dim)


def _round_up(n: int, m: int) -> int:
    return ((n + m - 1) // m) * m


def _fused_mlp_kernel(*refs, activations):
    """One batch tile through the entire MLP.

    refs = (x_ref, w0_ref, b0_ref, w1_ref, b1_ref, ..., o_ref)
    Intermediate activations live entirely on-chip (values in vregs/VMEM).
    """
    n_layers = len(activations)
    x_ref = refs[0]
    o_ref = refs[1 + 2 * n_layers]

    acc = x_ref[...].astype(jnp.float32)
    for i, act in enumerate(activations):
        w_ref = refs[1 + 2 * i]
        b_ref = refs[2 + 2 * i]
        acc = jnp.dot(acc, w_ref[...].astype(jnp.float32),
                      preferred_element_type=jnp.float32)   # MXU, f32 accumulate
        acc = acc + b_ref[...].astype(jnp.float32)           # (1, Dout) broadcasts
        if act == "relu":
            acc = jnp.maximum(acc, 0.0)
        elif act == "sigmoid":
            # exp goes to the EUP; exact form (matches jax.nn.sigmoid within tol).
            acc = 1.0 / (1.0 + jnp.exp(-acc))
        else:
            raise ValueError(f"unknown activation {act}")
    o_ref[...] = acc.astype(o_ref.dtype)


def mlp_forward(x, params, sigmoid_pos, *, batch_tile=256):
    """Fused MLP forward: matches MLP.forward (Linear -> Sigmoid/ReLU per layer).

    x:      (B, dims[0])
    params: list of (W:(Din, Dout), b:(1, Dout))  — W is PyTorch weight.T
    """
    n_layers = len(params)
    if sigmoid_pos == -1:
        sigmoid_pos = n_layers - 1          # == len(dims) - 2, as in the torch module
    activations = tuple(
        "sigmoid" if i == sigmoid_pos else "relu" for i in range(n_layers))

    B, d_in = x.shape
    dims = [d_in] + [w.shape[1] for (w, _) in params]
    dims_pad = [_round_up(d, LANE) for d in dims]          # lane-dense feature dims

    # Batch tiling: one tile covers the full (padded) feature width.
    tm = min(batch_tile, _round_up(B, SUBLANE))
    b_pad = _round_up(B, tm)
    grid = (b_pad // tm,)

    x_pad = jnp.pad(x, ((0, b_pad - B), (0, dims_pad[0] - dims[0])))

    padded_params = []
    for li, (w, b) in enumerate(params):
        dip, dop = dims_pad[li], dims_pad[li + 1]
        w_p = jnp.pad(w, ((0, dip - w.shape[0]), (0, dop - w.shape[1])))
        b_p = jnp.pad(b, ((0, 0), (0, dop - b.shape[1])))
        padded_params.append((w_p, b_p))

    # Specs: x/out move with the batch-tile index; weights/biases are resident
    # (index_map constant across the grid -> loaded into VMEM once).
    in_specs = [pl.BlockSpec((tm, dims_pad[0]), lambda i: (i, 0))]
    flat_inputs = [x_pad]
    for li, (w_p, b_p) in enumerate(padded_params):
        dip, dop = dims_pad[li], dims_pad[li + 1]
        in_specs.append(pl.BlockSpec((dip, dop), lambda i: (0, 0)))
        in_specs.append(pl.BlockSpec((1, dop), lambda i: (0, 0)))
        flat_inputs += [w_p, b_p]
    out_spec = pl.BlockSpec((tm, dims_pad[-1]), lambda i: (i, 0))

    # Advisory cost estimate for the XLA scheduler.
    flops = 2 * b_pad * sum(dims_pad[i] * dims_pad[i + 1] for i in range(n_layers))
    if 0 <= sigmoid_pos < n_layers:
        transcendentals = b_pad * dims_pad[sigmoid_pos + 1]
    else:
        transcendentals = 0
    itemsize = jnp.dtype(x.dtype).itemsize
    bytes_accessed = (
        x_pad.size * itemsize
        + sum(w.size * jnp.dtype(w.dtype).itemsize
              + b.size * jnp.dtype(b.dtype).itemsize for (w, b) in padded_params)
        + b_pad * dims_pad[-1] * itemsize)

    kernel = functools.partial(_fused_mlp_kernel, activations=activations)

    out_pad = pl.pallas_call(
        kernel,
        out_shape=jax.ShapeDtypeStruct((b_pad, dims_pad[-1]), x.dtype),
        grid=grid,
        in_specs=in_specs,
        out_specs=out_spec,
        compiler_params=pltpu.CompilerParams(
            dimension_semantics=("parallel",)),       # batch tiles across TCs (v7x)
        cost_estimate=pl.CostEstimate(
            flops=flops,
            transcendentals=transcendentals,
            bytes_accessed=bytes_accessed),
    )(*flat_inputs)

    return out_pad[:B, :dims[-1]]


def init_mlp_params(key, dims, dtype=jnp.float32):
    """Deterministic init matching MLP._init_weights:
       W ~ N(0, sqrt(2/(in+out))), b ~ N(0, sqrt(1/out))."""
    params = []
    for i in range(len(dims) - 1):
        d_in, d_out = dims[i], dims[i + 1]
        key, kw, kb = jax.random.split(key, 3)
        w_std = jnp.sqrt(2.0 / (d_in + d_out))
        b_std = jnp.sqrt(1.0 / d_out)
        # stored as (in, out) = PyTorch weight.T
        w = (jax.random.normal(kw, (d_in, d_out)) * w_std).astype(dtype)
        b = (jax.random.normal(kb, (1, d_out)) * b_std).astype(dtype)
        params.append((w, b))
    return params


def mlp_reference(x, params, sigmoid_pos):
    """Pure-JAX reference for sanity checking."""
    n_layers = len(params)
    if sigmoid_pos == -1:
        sigmoid_pos = n_layers - 1
    out = x
    for i, (w, b) in enumerate(params):
        out = out @ w + b[0]
        out = jax.nn.sigmoid(out) if i == sigmoid_pos else jax.nn.relu(out)
    return out


if __name__ == "__main__":
    dims = [32, 64, 48, 16]       # 3 Linear layers
    sigmoid_pos = -1              # sigmoid after the last Linear, ReLU elsewhere
    batch = 8

    key = jax.random.PRNGKey(0)
    key, kx = jax.random.split(key)
    x = jax.random.normal(kx, (batch, dims[0]), dtype=jnp.float32)
    params = init_mlp_params(key, dims)

    fwd = jax.jit(functools.partial(mlp_forward, sigmoid_pos=sigmoid_pos))
    out = fwd(x, params)
    out = jax.block_until_ready(out)

    ref = mlp_reference(x, params, sigmoid_pos)
    assert out.shape == (batch, dims[-1])
    assert jnp.allclose(out, ref, atol=1e-5, rtol=1e-5), "mismatch vs reference"

    print("KERNEL_OK")
</pallas_src>

<mosaic_0001>
module attributes {stable_mosaic.version = 11 : i64} {
  func.func @_fused_mlp_kernel(%arg0: i32, %arg1: memref<8x128xf32, #tpu.memory_space<vmem>>, %arg2: memref<128x128xf32, #tpu.memory_space<vmem>>, %arg3: memref<1x128xf32, #tpu.memory_space<vmem>>, %arg4: memref<128x128xf32, #tpu.memory_space<vmem>>, %arg5: memref<1x128xf32, #tpu.memory_space<vmem>>, %arg6: memref<128x128xf32, #tpu.memory_space<vmem>>, %arg7: memref<1x128xf32, #tpu.memory_space<vmem>>, %arg8: memref<8x128xf32, #tpu.memory_space<vmem>>) attributes {dimension_semantics = [#tpu.dimension_semantics<parallel>], iteration_bounds = array<i64: 1>, scalar_prefetch = 0 : i64, scratch_operands = 0 : i64, tpu.core_type = #tpu.core_type<tc>, window_params = [{transform_indices = @transform_0, window_bounds = array<i64: 8, 128>}, {pipeline_mode = #tpu.pipeline_mode<synchronous>, transform_indices = @transform_1, window_bounds = array<i64: 128, 128>}, {pipeline_mode = #tpu.pipeline_mode<synchronous>, transform_indices = @transform_2, window_bounds = array<i64: 1, 128>}, {pipeline_mode = #tpu.pipeline_mode<synchronous>, transform_indices = @transform_3, window_bounds = array<i64: 128, 128>}, {pipeline_mode = #tpu.pipeline_mode<synchronous>, transform_indices = @transform_4, window_bounds = array<i64: 1, 128>}, {pipeline_mode = #tpu.pipeline_mode<synchronous>, transform_indices = @transform_5, window_bounds = array<i64: 128, 128>}, {pipeline_mode = #tpu.pipeline_mode<synchronous>, transform_indices = @transform_6, window_bounds = array<i64: 1, 128>}, {transform_indices = @transform_7, window_bounds = array<i64: 8, 128>}]} {
    %c0 = arith.constant 0 : index
    %c0_0 = arith.constant 0 : index
    %0 = vector.load %arg1[%c0, %c0_0] : memref<8x128xf32, #tpu.memory_space<vmem>>, vector<8x128xf32>
    %c0_1 = arith.constant 0 : index
    %c0_2 = arith.constant 0 : index
    %1 = vector.load %arg2[%c0_1, %c0_2] : memref<128x128xf32, #tpu.memory_space<vmem>>, vector<128x128xf32>
    %cst = arith.constant dense<0.000000e+00> : vector<8x128xf32>
    %2 = tpu.matmul %0, %1, %cst {dimension_numbers = #tpu.dot_dimension_numbers<[1], [0], [0], [1], [0, 0, 1, 1], [], []>} : vector<8x128xf32>, vector<128x128xf32>, vector<8x128xf32> -> vector<8x128xf32>
    %c0_3 = arith.constant 0 : index
    %c0_4 = arith.constant 0 : index
    %3 = vector.load %arg3[%c0_3, %c0_4] : memref<1x128xf32, #tpu.memory_space<vmem>>, vector<1x128xf32>
    %4 = vector.broadcast %3 : vector<1x128xf32> to vector<8x128xf32>
    %5 = arith.addf %2, %4 : vector<8x128xf32>
    %cst_5 = arith.constant 0.000000e+00 : f32
    %6 = vector.broadcast %cst_5 : f32 to vector<8x128xf32>
    %7 = arith.maximumf %5, %6 : vector<8x128xf32>
    %c0_6 = arith.constant 0 : index
    %c0_7 = arith.constant 0 : index
    %8 = vector.load %arg4[%c0_6, %c0_7] : memref<128x128xf32, #tpu.memory_space<vmem>>, vector<128x128xf32>
    %cst_8 = arith.constant dense<0.000000e+00> : vector<8x128xf32>
    %9 = tpu.matmul %7, %8, %cst_8 {dimension_numbers = #tpu.dot_dimension_numbers<[1], [0], [0], [1], [0, 0, 1, 1], [], []>} : vector<8x128xf32>, vector<128x128xf32>, vector<8x128xf32> -> vector<8x128xf32>
    %c0_9 = arith.constant 0 : index
    %c0_10 = arith.constant 0 : index
    %10 = vector.load %arg5[%c0_9, %c0_10] : memref<1x128xf32, #tpu.memory_space<vmem>>, vector<1x128xf32>
    %11 = vector.broadcast %10 : vector<1x128xf32> to vector<8x128xf32>
    %12 = arith.addf %9, %11 : vector<8x128xf32>
    %cst_11 = arith.constant 0.000000e+00 : f32
    %13 = vector.broadcast %cst_11 : f32 to vector<8x128xf32>
    %14 = arith.maximumf %12, %13 : vector<8x128xf32>
    %c0_12 = arith.constant 0 : index
    %c0_13 = arith.constant 0 : index
    %15 = vector.load %arg6[%c0_12, %c0_13] : memref<128x128xf32, #tpu.memory_space<vmem>>, vector<128x128xf32>
    %cst_14 = arith.constant dense<0.000000e+00> : vector<8x128xf32>
    %16 = tpu.matmul %14, %15, %cst_14 {dimension_numbers = #tpu.dot_dimension_numbers<[1], [0], [0], [1], [0, 0, 1, 1], [], []>} : vector<8x128xf32>, vector<128x128xf32>, vector<8x128xf32> -> vector<8x128xf32>
    %c0_15 = arith.constant 0 : index
    %c0_16 = arith.constant 0 : index
    %17 = vector.load %arg7[%c0_15, %c0_16] : memref<1x128xf32, #tpu.memory_space<vmem>>, vector<1x128xf32>
    %18 = vector.broadcast %17 : vector<1x128xf32> to vector<8x128xf32>
    %19 = arith.addf %16, %18 : vector<8x128xf32>
    %cst_17 = arith.constant 0.000000e+00 : f32
    %20 = vector.broadcast %cst_17 : f32 to vector<8x128xf32>
    %21 = arith.subf %20, %19 : vector<8x128xf32>
    %22 = math.exp %21 : vector<8x128xf32>
    %cst_18 = arith.constant 1.000000e+00 : f32
    %23 = vector.broadcast %cst_18 : f32 to vector<8x128xf32>
    %24 = arith.addf %23, %22 : vector<8x128xf32>
    %cst_19 = arith.constant 1.000000e+00 : f32
    %25 = vector.broadcast %cst_19 : f32 to vector<8x128xf32>
    %26 = arith.divf %25, %24 : vector<8x128xf32>
    %c0_20 = arith.constant 0 : index
    %c0_21 = arith.constant 0 : index
    %27 = vector.load %arg8[%c0_20, %c0_21] : memref<8x128xf32, #tpu.memory_space<vmem>>, vector<8x128xf32>
    tpu.vector_store %arg8[%c0_20, %c0_21], %26 {strides = array<i32>} : memref<8x128xf32, #tpu.memory_space<vmem>>, vector<8x128xf32>,
    return
  }
  func.func @transform_0(%arg0: i32) -> (i32, i32) {
    %c0_i32 = arith.constant 0 : i32
    %c0_i32_0 = arith.constant 0 : i32
    return %arg0, %c0_i32 : i32, i32
  }
  func.func @transform_1(%arg0: i32) -> (i32, i32) {
    %c0_i32 = arith.constant 0 : i32
    %c0_i32_0 = arith.constant 0 : i32
    %c0_i32_1 = arith.constant 0 : i32
    return %c0_i32, %c0_i32_0 : i32, i32
  }
  func.func @transform_2(%arg0: i32) -> (i32, i32) {
    %c0_i32 = arith.constant 0 : i32
    %c0_i32_0 = arith.constant 0 : i32
    %c0_i32_1 = arith.constant 0 : i32
    return %c0_i32, %c0_i32_0 : i32, i32
  }
  func.func @transform_3(%arg0: i32) -> (i32, i32) {
    %c0_i32 = arith.constant 0 : i32
    %c0_i32_0 = arith.constant 0 : i32
    %c0_i32_1 = arith.constant 0 : i32
    return %c0_i32, %c0_i32_0 : i32, i32
  }
  func.func @transform_4(%arg0: i32) -> (i32, i32) {
    %c0_i32 = arith.constant 0 : i32
    %c0_i32_0 = arith.constant 0 : i32
    %c0_i32_1 = arith.constant 0 : i32
    return %c0_i32, %c0_i32_0 : i32, i32
  }
  func.func @transform_5(%arg0: i32) -> (i32, i32) {
    %c0_i32 = arith.constant 0 : i32
    %c0_i32_0 = arith.constant 0 : i32
    %c0_i32_1 = arith.constant 0 : i32
    return %c0_i32, %c0_i32_0 : i32, i32
  }
  func.func @transform_6(%arg0: i32) -> (i32, i32) {
    %c0_i32 = arith.constant 0 : i32
    %c0_i32_0 = arith.constant 0 : i32
    %c0_i32_1 = arith.constant 0 : i32
    return %c0_i32, %c0_i32_0 : i32, i32
  }
  func.func @transform_7(%arg0: i32) -> (i32, i32) {
    %c0_i32 = arith.constant 0 : i32
    %c0_i32_0 = arith.constant 0 : i32
    return %arg0, %c0_i32 : i32, i32
  }
}

</mosaic_0001>

<bundles_post_ra>
// kernel: mlp_forward.1
= control target key start
LH: loop header
LB: loop body
LE: loop exit
PB: predicated region body
PF: predicated region fallthrough
CT: control target
= control target key end

     0   :  { %s420_s0 = inlined_call_operand.vmem [shape: f32[8,128], index: 0, kind: input, shape index: {}]   ;;  %s421_s1 = inlined_call_operand.vmem [shape: f32[128,128], index: 1, kind: input, shape index: {}]   ;;  %s422_s2 = inlined_call_operand.vmem [shape: f32[1,128], index: 2, kind: input, shape index: {}]   ;;  %s423_s3 = inlined_call_operand.vmem [shape: f32[128,128], index: 3, kind: input, shape index: {}]   ;;  %s424_s4 = inlined_call_operand.vmem [shape: f32[1,128], index: 4, kind: input, shape index: {}]   ;;  %s425_s5 = inlined_call_operand.vmem [shape: f32[128,128], index: 5, kind: input, shape index: {}]   ;;  %s426_s6 = inlined_call_operand.vmem [shape: f32[1,128], index: 6, kind: input, shape index: {}]   ;;  %s427_s7 = inlined_call_operand.hbm [shape: f32[8,128], index: 7, kind: output, shape index: {}]  }
   0x1   :  { %v43_v0 = vld [vmem:[%s421_s1 + $0x78] sm:$0xff]  ;;  %v42_v1 = vld [vmem:[%s421_s1 + $0x70] sm:$0xff]  ;;  %v41_v2 = vld [vmem:[%s421_s1 + $0x68] sm:$0xff] }
   0x2   :  { %48 = vmatpush.msra.mxu0 %v43_v0  ;;  %v40_v3 = vld [vmem:[%s421_s1 + $0x60] sm:$0xff]  ;;  %v84_v4 = vld [vmem:[%s423_s3 + $0x78] sm:$0xff]  ;;  %v83_v6 = vld [vmem:[%s423_s3 + $0x70] sm:$0xff] }
   0x3   :  { %v39_v5 = vld [vmem:[%s421_s1 + $0x58] sm:$0xff]  ;;  %89 = vmatpush.msra.mxu1 %v84_v4  ;;  %v82_v7 = vld [vmem:[%s423_s3 + $0x68] sm:$0xff]  ;;  %v38_v8 = vld [vmem:[%s421_s1 + $0x50] sm:$0xff] }
   0x4   :  { %49 = vmatpush.msra.mxu0 %v42_v1  ;;  %v81_v9 = vld [vmem:[%s423_s3 + $0x60] sm:$0xff]  ;;  %v37_v10 = vld [vmem:[%s421_s1 + $0x48] sm:$0xff]  ;;  %v80_v11 = vld [vmem:[%s423_s3 + $0x58] sm:$0xff] }
   0x5   :  { %90 = vmatpush.msra.mxu1 %v83_v6 }
   0x6   :  { %50 = vmatpush.msra.mxu0 %v41_v2 }
   0x7   :  { %91 = vmatpush.msra.mxu1 %v82_v7 }
   0x8   :  { %51 = vmatpush.msra.mxu0 %v40_v3 }
   0xa   :  { %52 = vmatpush.msra.mxu0 %v39_v5 }
   0xc   :  { %53 = vmatpush.msra.mxu0 %v38_v8 }
   0xd   :  { %12 = vsyncpa [#allocation3], 0  ;;  %v36_v12 = vld [vmem:[%s421_s1 + $0x40] sm:$0xff]  ;;  %92 = vmatpush.msra.mxu1 %v81_v9  ;;  %v79_v13 = vld [vmem:[%s423_s3 + $0x50] sm:$0xff] }
   0xe   :  { %54 = vmatpush.msra.mxu0 %v37_v10  ;;  %v35_v14 = vld [vmem:[%s421_s1 + $0x38] sm:$0xff]  ;;  %v78_v15 = vld [vmem:[%s423_s3 + $0x48] sm:$0xff]  ;;  %v34_v16 = vld [vmem:[%s421_s1 + $0x30] sm:$0xff] }
   0xf   :  { %93 = vmatpush.msra.mxu1 %v80_v11  ;;  %v77_v17 = vld [vmem:[%s423_s3 + $0x40] sm:$0xff]  ;;  %v33_v18 = vld [vmem:[%s421_s1 + $0x28] sm:$0xff]  ;;  %v76_v19 = vld [vmem:[%s423_s3 + $0x38] sm:$0xff] }
  0x10   :  { %55 = vmatpush.msra.mxu0 %v36_v12  ;;  %v32_v20 = vld [vmem:[%s421_s1 + $0x20] sm:$0xff]  ;;  %v75_v21 = vld [vmem:[%s423_s3 + $0x30] sm:$0xff]  ;;  %v31_v22 = vld [vmem:[%s421_s1 + $0x18] sm:$0xff] }
  0x11   :  { %94 = vmatpush.msra.mxu1 %v79_v13  ;;  %v74_v23 = vld [vmem:[%s423_s3 + $0x28] sm:$0xff]  ;;  %v30_v24 = vld [vmem:[%s421_s1 + $0x10] sm:$0xff]  ;;  %v73_v25 = vld [vmem:[%s423_s3 + $0x20] sm:$0xff] }
  0x12   :  { %56 = vmatpush.msra.mxu0 %v35_v14  ;;  %v29_v26 = vld [vmem:[%s421_s1 + $0x8] sm:$0xff]  ;;  %v72_v27 = vld [vmem:[%s423_s3 + $0x18] sm:$0xff]  ;;  %v28_v28 = vld [vmem:[%s421_s1] sm:$0xff] }
  0x13   :  { %95 = vmatpush.msra.mxu1 %v78_v15  ;;  %v27_v29 = vld [vmem:[%s420_s0] sm:$0xff]  ;;  %v71_v30 = vld [vmem:[%s423_s3 + $0x10] sm:$0xff]  ;;  %v70_v31 = vld [vmem:[%s423_s3 + $0x8] sm:$0xff] }
  0x14   :  { %57 = vmatpush.msra.mxu0 %v34_v16  ;;  %v69_v32 = vld [vmem:[%s423_s3] sm:$0xff]  ;;  %v125_v33 = vld [vmem:[%s425_s5 + $0x78] sm:$0xff]  ;;  %v124_v34 = vld [vmem:[%s425_s5 + $0x70] sm:$0xff] }
  0x15   :  { %96 = vmatpush.msra.mxu1 %v77_v17  ;;  %130 = vmatpush.msra.mxu2 %v125_v33  ;;  %v123_v35 = vld [vmem:[%s425_s5 + $0x68] sm:$0xff]  ;;  %v122_v36 = vld [vmem:[%s425_s5 + $0x60] sm:$0xff]  ;;  %v121_v37 = vld [vmem:[%s425_s5 + $0x58] sm:$0xff] }
  0x16   :  { %58 = vmatpush.msra.mxu0 %v33_v18  ;;  %v120_v38 = vld [vmem:[%s425_s5 + $0x50] sm:$0xff]  ;;  %v119_v39 = vld [vmem:[%s425_s5 + $0x48] sm:$0xff]  ;;  %v118_v40 = vld [vmem:[%s425_s5 + $0x40] sm:$0xff] }
  0x17   :  { %97 = vmatpush.msra.mxu1 %v76_v19  ;;  %131 = vmatpush.msra.mxu2 %v124_v34  ;;  %v117_v41 = vld [vmem:[%s425_s5 + $0x38] sm:$0xff]  ;;  %v116_v42 = vld [vmem:[%s425_s5 + $0x30] sm:$0xff]  ;;  %v115_v43 = vld [vmem:[%s425_s5 + $0x28] sm:$0xff] }
  0x18   :  { %59 = vmatpush.msra.mxu0 %v32_v20  ;;  %v114_v44 = vld [vmem:[%s425_s5 + $0x20] sm:$0xff]  ;;  %v113_v45 = vld [vmem:[%s425_s5 + $0x18] sm:$0xff]  ;;  %v112_v50 = vld [vmem:[%s425_s5 + $0x10] sm:$0xff] }
  0x19   :  { %98 = vmatpush.msra.mxu1 %v75_v21  ;;  %132 = vmatpush.msra.mxu2 %v123_v35  ;;  %v187_v46 = vld [vmem:[%s422_s2] ss:$0 sm:$0xff]  ;;  %v111_v51 = vld [vmem:[%s425_s5 + $0x8] sm:$0xff] }
  0x1a   :  { %60 = vmatpush.msra.mxu0 %v31_v22  ;;  %v110_v52 = vld [vmem:[%s425_s5] sm:$0xff] }
  0x1b   :  { %99 = vmatpush.msra.mxu1 %v74_v23  ;;  %133 = vmatpush.msra.mxu2 %v122_v36  ;;  %v188_v53 = vld [vmem:[%s424_s4] ss:$0 sm:$0xff]  ;;  %s220_s4 = smov [#allocation2]  }
  0x1c   :  { %61 = vmatpush.msra.mxu0 %v30_v24  ;;  %v189_v57 = vld [vmem:[%s426_s6] ss:$0 sm:$0xff]  ;;  %s175_s5 = sshll.u32 %s220_s4, 4  ;;  %s177_s6 = sshll.u32 %s427_s7, 4  ;;  %s176_s5 = int_to_ptr.vmem [resolvable:$true] %s175_s5  ;;  %s178_s6 = int_to_ptr.hbm [resolvable:$true] %s177_s6 }
  0x1d   :  { %100 = vmatpush.msra.mxu1 %v73_v25  ;;  %134 = vmatpush.msra.mxu2 %v121_v37 }
  0x1e   :  { %62 = vmatpush.msra.mxu0 %v29_v26 }
  0x1f   :  { %101 = vmatpush.msra.mxu1 %v72_v27  ;;  %135 = vmatpush.msra.mxu2 %v120_v38 }
  0x20   :  { %63 = vmatpush.msra.mxu0 %v28_v28 }
  0x21   :  { %64 = vmatmul.f32.vlgmr.msra.gmra.mxu0 %v27_v29  ;;  %102 = vmatpush.msra.mxu1 %v71_v30 }
  0x22   :  { %136 = vmatpush.msra.mxu2 %v119_v39 }
  0x23   :  { %103 = vmatpush.msra.mxu1 %v70_v31 }
  0x24   :  { %137 = vmatpush.msra.mxu2 %v118_v40 }
  0x25   :  { %104 = vmatpush.msra.mxu1 %v69_v32 }
  0x26   :  { %138 = vmatpush.msra.mxu2 %v117_v41 }
  0x28   :  { %139 = vmatpush.msra.mxu2 %v116_v42 }
  0x2a   :  { %140 = vmatpush.msra.mxu2 %v115_v43 }
  0x2c   :  { %141 = vmatpush.msra.mxu2 %v114_v44 }
  0x2e   :  { %142 = vmatpush.msra.mxu2 %v113_v45 }
  0x30   :  { %143 = vmatpush.msra.mxu2 %v112_v50 }
  0x32   :  { %144 = vmatpush.msra.mxu2 %v111_v51 }
  0x34   :  { %145 = vmatpush.msra.mxu2 %v110_v52 }
  0x9e   :  { %v65_v47 = vpop.f32.mrf.mxu0 }
  0x9f   :  { %v66_v48 = vadd.f32 %v187_v46, %v65_v47 }
  0xa1   :  { %v68_v49 = vmax.f32 %v66_v48, 0.0 }
  0xa3   :  { %105 = vmatmul.f32.vlgmr.msra.gmra.mxu1 %v68_v49 }
 0x120   :  { %v106_v54 = vpop.f32.mrf.mxu1 }
 0x121   :  { %v107_v55 = vadd.f32 %v188_v53, %v106_v54 }
 0x123   :  { %v109_v56 = vmax.f32 %v107_v55, 0.0 }
 0x125   :  { %146 = vmatmul.f32.vlgmr.msra.gmra.mxu2 %v109_v56 }
 0x1a8   :  { %v147_v58 = vpop.f32.mrf.mxu2 }
 0x1a9   :  { %v148_v59 = vadd.f32 %v189_v57, %v147_v58 }
 0x1ab   :  { %v150_v60 = vsub.f32 0.0, %v148_v59 }
 0x1ad   :  { %v151_v61 = vmul.f32 1.442695, %v150_v60 }
 0x1af   :  { %190 = vpow2.f32 %v151_v61 }
 0x1b5   :  { %v191_v62 = vpop.eup %190 }
 0x1b6   :  { %v153_v63 = vadd.f32 1.0, %v191_v62 }
 0x1b8   :  { %192 = vrcp.f32 %v153_v63  ;;  %v165_v3 = vand.u32 2147483648, %v153_v63  ;;  %v163_v5 = vand.u32 2147483647, %v153_v63  ;;  %vm159_vm1 = vweird.f32 %v153_v63 }
 0x1ba   :  { %v166_v7 = vor.u32 1.1754944e-38, %v165_v3  ;;  %vm164_vm3 = vcmp.eq.f32.partialorder %v163_v5, 8.507059e+37 }
 0x1be   :  { %v193_v0 = vpop.eup %192 }
 0x1bf   :  { %v155_v1 = vmul.f32 %v193_v0, %v153_v63  ;;  %vm160_vm0 = vweird.f32 %v193_v0 }
 0x1c0   :  { %vm161_vm2 = vmor %vm159_vm1, %vm160_vm0 }
 0x1c1   :  { %v156_v2 = vsub.f32 1.0, %v155_v1 }
 0x1c3   :  { %v157_v4 = vmul.f32 %v193_v0, %v156_v2 }
 0x1c5   :  { %v158_v6 = vadd.f32 %v193_v0, %v157_v4 }
 0x1c7   :  { %v162_v8 = vsel %vm161_vm2, %v193_v0, %v158_v6 }
 0x1c8   :  { %v167_v9 = vsel %vm164_vm3, %v166_v7, %v162_v8 }
 0x1c9   :  { %169 = vst [vmem:[#allocation2] sm:$0xff] %v167_v9 }
 0x1ca   :  { %180 = dma.vmem_to_hbm [thread:$0]  %s176_s5, 128, %s178_s6, [#allocation3]  }
 0x1cb   :  { %218 = dma.done.wait [#allocation3], 128  }
 0x1cc   :  { %219 = vsyncadd [#allocation3], 4294967168 }
 0x1cd   :  { %185 = vsyncpa [#allocation3], 1 }

</bundles_post_ra>
